<compile_context>
chip_gen: v6e
topology: v6e:2x2x1
jax: 0.10.0
libtpu: 0.0.40
codegen_flags: <defaults>
</compile_context>

<pallas_src>
import jax
import jax.numpy as jnp
from jax import lax
from jax.experimental import pallas as pl
from jax.experimental.pallas import tpu as pltpu


# ----------------------------- Pallas kernel ------------------------------- #

def _make_fused_tcn_kernel(*, k, dilation, P, PADR, TT, Cin, Cout,
                           has_downsample, mxu_dtype):
    """Build the fused TemporalBlock kernel (static, padded config baked in)."""
    d = dilation

    def kernel(*refs):
        if has_downsample:
            (x_ref, w1_ref, b1_ref, w2_ref, b2_ref, wd_ref, bd_ref,
             o_ref, x_stream, h1_stream) = refs
        else:
            (x_ref, w1_ref, b1_ref, w2_ref, b2_ref,
             o_ref, x_stream, h1_stream) = refs
            wd_ref = bd_ref = None

        t = pl.program_id(1)

        @pl.when(t == 0)
        def _init_halos():
            # Causal zero left-padding for the first time tile of every batch row.
            # (A core iterates t fastest, so each new batch row starts at t == 0.)
            x_stream[pl.ds(0, PADR), :] = jnp.zeros((PADR, Cin), mxu_dtype)
            h1_stream[pl.ds(0, PADR), :] = jnp.zeros((PADR, Cout), mxu_dtype)

        # Write the current x tile once, at an 8-aligned sublane offset.
        x_cur = x_ref[0]                                            # (TT, Cin), io dtype
        x_stream[pl.ds(PADR, TT), :] = x_cur.astype(mxu_dtype)

        def dilated_conv_relu(stream, w_ref, b_ref, C):
            # k accumulating MXU matmuls; taps read straight from the stream scratch.
            acc = None
            for j in range(k):
                tap = stream[pl.ds(PADR - P + j * d, TT), :]        # (TT, C)
                wj = w_ref[pl.ds(j * C, C), :]                      # (C, Cout)
                part = jnp.dot(tap, wj, preferred_element_type=jnp.float32)
                acc = part if acc is None else acc + part
            return jnp.maximum(acc + b_ref[...].astype(jnp.float32), 0.0)

        # conv1 -> chomp -> relu   (dropout1 == identity in eval mode)
        h1 = dilated_conv_relu(x_stream, w1_ref, b1_ref, Cin)       # (TT, Cout) f32
        h1_stream[pl.ds(PADR, TT), :] = h1.astype(mxu_dtype)
        # conv2 -> chomp -> relu   (dropout2 == identity in eval mode)
        h2 = dilated_conv_relu(h1_stream, w2_ref, b2_ref, Cout)     # (TT, Cout) f32

        # Residual branch (1x1 conv downsample iff Cin != Cout), fused in-pass.
        if has_downsample:
            res = jnp.dot(x_cur.astype(mxu_dtype), wd_ref[...],
                          preferred_element_type=jnp.float32)
            res = res + bd_ref[...].astype(jnp.float32)
        else:
            res = x_cur.astype(jnp.float32)

        o_ref[0] = jnp.maximum(h2 + res, 0.0).astype(o_ref.dtype)

        # Carry only the P causal halo rows forward to the next time tile (TT >= P
        # guarantees the source and destination windows do not overlap).
        x_stream[pl.ds(PADR - P, P), :] = x_stream[pl.ds(PADR + TT - P, P), :]
        h1_stream[pl.ds(PADR - P, P), :] = h1_stream[pl.ds(PADR + TT - P, P), :]

    return kernel


# ------------------------------ JAX wrapper -------------------------------- #

def _round_up(x, m):
    return ((x + m - 1) // m) * m


def _pick_time_tile(L, P, max_rows=1024):
    """Time tile: multiple of 8, >= causal halo, <= max_rows, minimal tail padding."""
    lo = max(_round_up(P, 8), 8)
    L8 = _round_up(L, 8)
    if L8 <= max_rows:
        return max(L8, lo)
    best, best_waste = None, None
    for tt in range(max_rows - (max_rows % 8), lo - 1, -8):
        waste = (-L) % tt
        if best is None or waste < best_waste:
            best, best_waste = tt, waste
        if waste == 0:
            break
    return best if best is not None else lo


def temporal_block_forward(x_ncl, params, *, kernel_size, dilation, padding,
                           time_tile=None, io_dtype=jnp.bfloat16,
                           mxu_dtype=jnp.bfloat16):
    """Forward pass of TemporalBlock.  x_ncl: (B, C_in, L) like PyTorch Conv1d."""
    B, Cin, L = x_ncl.shape
    k, d, P = kernel_size, dilation, padding
    assert P == (k - 1) * d, "TCN causal setup requires padding == (k-1)*dilation"
    assert P >= 1, "kernel_size must be >= 2 for this Pallas path"
    Cout = params["w1"].shape[0]
    has_downsample = params.get("wd") is not None
    if not has_downsample:
        assert Cin == Cout, "identity residual requires Cin == Cout"

    LANE = 128
    Cin_p, Cout_p = _round_up(Cin, LANE), _round_up(Cout, LANE)
    PADR = _round_up(P, 8)                       # 8-aligned pad region of the streams
    min_tt = max(PADR, 8)

    TT = int(time_tile) if time_tile is not None else _pick_time_tile(L, P)
    TT = max(_round_up(TT, 8), min_tt)

    def vmem_est(tt):
        io_b = jnp.dtype(io_dtype).itemsize
        mx_b = jnp.dtype(mxu_dtype).itemsize
        tiles = 2 * 2 * tt * (Cin_p + Cout_p) * io_b          # double-buffered x / out
        weights = 2 * (k * Cin_p * Cout_p + k * Cout_p * Cout_p
                       + Cin_p * Cout_p) * mx_b
        biases = 2 * 3 * Cout_p * 4
        streams = (PADR + tt) * (Cin_p + Cout_p) * mx_b
        return tiles + weights + biases + streams + (2 << 20)

    # Shrink the tile if the footprint would blow the (v7x-safe) VMEM budget.
    while TT > min_tt and vmem_est(TT) > (48 << 20):
        TT = max(min_tt, _round_up(TT // 2, 8))
    Lp = _round_up(L, TT)                        # ragged L handled by zero tail padding

    # NCL -> (B, T, C), channels padded to 128 lanes, time padded to a tile multiple.
    # TODO(synk): keep the surrounding model in (B, T, C)/bf16 end-to-end to drop this
    # transpose+pad pass (it is a separate mem-bound XLA op on the activation).
    x_btc = jnp.transpose(x_ncl, (0, 2, 1)).astype(io_dtype)
    x_btc = jnp.pad(x_btc, ((0, 0), (0, Lp - L), (0, Cin_p - Cin)))

    # PyTorch Conv1d weight (Cout, Cin, k) -> (k*Cin_p, Cout_p): tap-major rows so each
    # dilated tap is a free row-slice inside the kernel; zero-padded channels.
    def pack_w(w, cin, cin_p):
        wp = jnp.pad(w, ((0, Cout_p - Cout), (0, cin_p - cin), (0, 0)))
        return jnp.transpose(wp, (2, 1, 0)).reshape(k * cin_p, Cout_p).astype(mxu_dtype)

    def pack_b(b):
        return jnp.pad(b, (0, Cout_p - Cout)).reshape(1, Cout_p).astype(jnp.float32)

    w1 = pack_w(params["w1"], Cin, Cin_p)
    b1 = pack_b(params["b1"])
    w2 = pack_w(params["w2"], Cout, Cout_p)
    b2 = pack_b(params["b2"])

    const2d = lambda b, t: (0, 0)   # weights/bias: VMEM-resident across all grid steps
    in_specs = [
        pl.BlockSpec((1, TT, Cin_p), lambda b, t: (b, t, 0)),
        pl.BlockSpec((k * Cin_p, Cout_p), const2d),
        pl.BlockSpec((1, Cout_p), const2d),
        pl.BlockSpec((k * Cout_p, Cout_p), const2d),
        pl.BlockSpec((1, Cout_p), const2d),
    ]
    operands = [x_btc, w1, b1, w2, b2]
    if has_downsample:
        wd = jnp.pad(params["wd"][:, :, 0], ((0, Cout_p - Cout), (0, Cin_p - Cin)))
        wd = jnp.transpose(wd, (1, 0)).astype(mxu_dtype)            # (Cin_p, Cout_p)
        bd = pack_b(params["bd"])
        in_specs += [pl.BlockSpec((Cin_p, Cout_p), const2d),
                     pl.BlockSpec((1, Cout_p), const2d)]
        operands += [wd, bd]

    kernel = _make_fused_tcn_kernel(k=k, dilation=d, P=P, PADR=PADR, TT=TT,
                                    Cin=Cin_p, Cout=Cout_p,
                                    has_downsample=has_downsample,
                                    mxu_dtype=mxu_dtype)

    out_btc = pl.pallas_call(
        kernel,
        out_shape=jax.ShapeDtypeStruct((B, Lp, Cout_p), io_dtype),
        grid_spec=pltpu.PrefetchScalarGridSpec(
            num_scalar_prefetch=0,
            grid=(B, Lp // TT),
            in_specs=in_specs,
            out_specs=pl.BlockSpec((1, TT, Cout_p), lambda b, t: (b, t, 0)),
            scratch_shapes=[pltpu.VMEM((PADR + TT, Cin_p), mxu_dtype),   # x stream
                            pltpu.VMEM((PADR + TT, Cout_p), mxu_dtype)], # h1 stream
        ),
        compiler_params=pltpu.CompilerParams(
            # Batch tiles are independent (megacore); time is sequential because the
            # causal halo is carried in scratch -> never mark it "parallel" as-is.
            dimension_semantics=("parallel", "arbitrary"),
            vmem_limit_bytes=int(min(max(vmem_est(TT), 32 << 20), 64 << 20)),
        ),
    )(*operands)

    out = out_btc[:, :L, :Cout]                       # drop time tail + channel padding
    return jnp.transpose(out, (0, 2, 1)).astype(x_ncl.dtype)        # back to (B, Cout, L)


# -------------------------- pure-JAX reference ------------------------------ #

def temporal_block_reference(x, params, *, kernel_size, dilation, padding):
    p, d = padding, dilation

    def conv1d(inp, w, b, dil, pad):
        y = lax.conv_general_dilated(
            inp, w, window_strides=(1,), padding=[(pad, pad)],
            rhs_dilation=(dil,), dimension_numbers=("NCH", "OIH", "NCH"))
        return y + b[None, :, None]

    h = conv1d(x, params["w1"], params["b1"], d, p)[:, :, :-p]
    h = jax.nn.relu(h)
    h = conv1d(h, params["w2"], params["b2"], d, p)[:, :, :-p]
    h = jax.nn.relu(h)
    if params.get("wd") is None:
        res = x
    else:
        res = conv1d(x, params["wd"], params["bd"], 1, 0)
    return jax.nn.relu(h + res)


# ----------------------------------- main ----------------------------------- #

if __name__ == "__main__":
    def make_params(key, Cin, Cout, k, with_downsample):
        keys = jax.random.split(key, 6)
        p = {
            "w1": 0.01 * jax.random.normal(keys[0], (Cout, Cin, k), jnp.float32),
            "b1": 0.01 * jax.random.normal(keys[1], (Cout,), jnp.float32),
            "w2": 0.01 * jax.random.normal(keys[2], (Cout, Cout, k), jnp.float32),
            "b2": 0.01 * jax.random.normal(keys[3], (Cout,), jnp.float32),
            "wd": None,
            "bd": None,
        }
        if with_downsample:
            p["wd"] = 0.01 * jax.random.normal(keys[4], (Cout, Cin, 1), jnp.float32)
            p["bd"] = 0.01 * jax.random.normal(keys[5], (Cout,), jnp.float32)
        return p

    root = jax.random.PRNGKey(0)
    k_p1, k_x1, k_p2, k_x2 = jax.random.split(root, 4)

    kernel_size, dilation = 3, 2
    padding = (kernel_size - 1) * dilation

    # Case 1 (f32 exact path): Cin != Cout -> 1x1 downsample residual; 4 time tiles
    # exercise the halo carry.
    B, Cin, Cout, L = 2, 8, 16, 64
    params = make_params(k_p1, Cin, Cout, kernel_size, True)
    x = jax.random.normal(k_x1, (B, Cin, L), jnp.float32)
    out = jax.block_until_ready(temporal_block_forward(
        x, params, kernel_size=kernel_size, dilation=dilation, padding=padding,
        time_tile=16, io_dtype=jnp.float32, mxu_dtype=jnp.float32))
    ref = temporal_block_reference(
        x, params, kernel_size=kernel_size, dilation=dilation, padding=padding)
    assert out.shape == (B, Cout, L), out.shape
    assert jnp.allclose(out, ref, atol=1e-5, rtol=1e-5), \
        f"case1 max abs diff {jnp.max(jnp.abs(out - ref))}"

    # Case 2 (f32 exact path): Cin == Cout -> identity residual; ragged L (not a
    # multiple of 8) exercises the time tail padding.
    B2, C2, L2 = 2, 16, 37
    params2 = make_params(k_p2, C2, C2, kernel_size, False)
    x2 = jax.random.normal(k_x2, (B2, C2, L2), jnp.float32)
    out2 = jax.block_until_ready(temporal_block_forward(
        x2, params2, kernel_size=kernel_size, dilation=dilation, padding=padding,
        io_dtype=jnp.float32, mxu_dtype=jnp.float32))
    ref2 = temporal_block_reference(
        x2, params2, kernel_size=kernel_size, dilation=dilation, padding=padding)
    assert out2.shape == (B2, C2, L2), out2.shape
    assert jnp.allclose(out2, ref2, atol=1e-5, rtol=1e-5), \
        f"case2 max abs diff {jnp.max(jnp.abs(out2 - ref2))}"

    # Case 3 (default bf16 fast path): same data as case 1, relaxed tolerance.
    out3 = jax.block_until_ready(temporal_block_forward(
        x, params, kernel_size=kernel_size, dilation=dilation, padding=padding))
    assert out3.shape == (B, Cout, L), out3.shape
    assert jnp.allclose(out3, ref, atol=3e-2, rtol=3e-2), \
        f"case3 (bf16) max abs diff {jnp.max(jnp.abs(out3 - ref))}"

    print("KERNEL_OK")
</pallas_src>

<mosaic_0001>
module attributes {stable_mosaic.version = 11 : i64} {
  func.func @kernel(%arg0: i32, %arg1: i32, %arg2: memref<1x16x128xf32, #tpu.memory_space<vmem>>, %arg3: memref<384x128xf32, #tpu.memory_space<vmem>>, %arg4: memref<1x128xf32, #tpu.memory_space<vmem>>, %arg5: memref<384x128xf32, #tpu.memory_space<vmem>>, %arg6: memref<1x128xf32, #tpu.memory_space<vmem>>, %arg7: memref<128x128xf32, #tpu.memory_space<vmem>>, %arg8: memref<1x128xf32, #tpu.memory_space<vmem>>, %arg9: memref<1x16x128xf32, #tpu.memory_space<vmem>>, %arg10: memref<24x128xf32, #tpu.memory_space<vmem>>, %arg11: memref<24x128xf32, #tpu.memory_space<vmem>>) attributes {dimension_semantics = [#tpu.dimension_semantics<parallel>, #tpu.dimension_semantics<arbitrary>], iteration_bounds = array<i64: 2, 4>, scalar_prefetch = 0 : i64, scratch_operands = 2 : i64, tpu.core_type = #tpu.core_type<tc>, window_params = [{transform_indices = @transform_0, window_bounds = array<i64: 1, 16, 128>}, {pipeline_mode = #tpu.pipeline_mode<synchronous>, transform_indices = @transform_1, window_bounds = array<i64: 384, 128>}, {pipeline_mode = #tpu.pipeline_mode<synchronous>, transform_indices = @transform_2, window_bounds = array<i64: 1, 128>}, {pipeline_mode = #tpu.pipeline_mode<synchronous>, transform_indices = @transform_3, window_bounds = array<i64: 384, 128>}, {pipeline_mode = #tpu.pipeline_mode<synchronous>, transform_indices = @transform_4, window_bounds = array<i64: 1, 128>}, {pipeline_mode = #tpu.pipeline_mode<synchronous>, transform_indices = @transform_5, window_bounds = array<i64: 128, 128>}, {pipeline_mode = #tpu.pipeline_mode<synchronous>, transform_indices = @transform_6, window_bounds = array<i64: 1, 128>}, {transform_indices = @transform_7, window_bounds = array<i64: 1, 16, 128>}]} {
    %c0_i32 = arith.constant 0 : i32
    %0 = arith.cmpi eq, %arg1, %c0_i32 : i32
    %1 = arith.extui %0 : i1 to i32
    %c0_i32_0 = arith.constant 0 : i32
    %2 = arith.cmpi ne, %1, %c0_i32_0 : i32
    scf.if %2 {
      %cst_53 = arith.constant 0.000000e+00 : f32
      %54 = vector.broadcast %cst_53 : f32 to vector<8x128xf32>
      %c0_54 = arith.constant 0 : index
      %c0_55 = arith.constant 0 : index
      %55 = vector.load %arg10[%c0_54, %c0_55] : memref<24x128xf32, #tpu.memory_space<vmem>>, vector<8x128xf32>
      tpu.vector_store %arg10[%c0_54, %c0_55], %54 {strides = array<i32>} : memref<24x128xf32, #tpu.memory_space<vmem>>, vector<8x128xf32>,
      %cst_56 = arith.constant 0.000000e+00 : f32
      %56 = vector.broadcast %cst_56 : f32 to vector<8x128xf32>
      %c0_57 = arith.constant 0 : index
      %c0_58 = arith.constant 0 : index
      %57 = vector.load %arg11[%c0_57, %c0_58] : memref<24x128xf32, #tpu.memory_space<vmem>>, vector<8x128xf32>
      tpu.vector_store %arg11[%c0_57, %c0_58], %56 {strides = array<i32>} : memref<24x128xf32, #tpu.memory_space<vmem>>, vector<8x128xf32>,
    } else {
    }
    %c0 = arith.constant 0 : index
    %c0_1 = arith.constant 0 : index
    %c0_2 = arith.constant 0 : index
    %3 = vector.load %arg2[%c0, %c0_1, %c0_2] : memref<1x16x128xf32, #tpu.memory_space<vmem>>, vector<1x16x128xf32>
    %4 = vector.shape_cast %3 : vector<1x16x128xf32> to vector<16x128xf32>
    %c8 = arith.constant 8 : index
    %c0_3 = arith.constant 0 : index
    %5 = vector.load %arg10[%c8, %c0_3] : memref<24x128xf32, #tpu.memory_space<vmem>>, vector<16x128xf32>
    tpu.vector_store %arg10[%c8, %c0_3], %4 {strides = array<i32>} : memref<24x128xf32, #tpu.memory_space<vmem>>, vector<16x128xf32>,
    %c4 = arith.constant 4 : index
    %c0_4 = arith.constant 0 : index
    %6 = vector.load %arg10[%c4, %c0_4] : memref<24x128xf32, #tpu.memory_space<vmem>>, vector<16x128xf32>
    %c0_5 = arith.constant 0 : index
    %c0_6 = arith.constant 0 : index
    %7 = vector.load %arg3[%c0_5, %c0_6] : memref<384x128xf32, #tpu.memory_space<vmem>>, vector<128x128xf32>
    %cst = arith.constant dense<0.000000e+00> : vector<16x128xf32>
    %8 = tpu.matmul %6, %7, %cst {dimension_numbers = #tpu.dot_dimension_numbers<[1], [0], [0], [1], [0, 0, 1, 1], [], []>} : vector<16x128xf32>, vector<128x128xf32>, vector<16x128xf32> -> vector<16x128xf32>
    %c6 = arith.constant 6 : index
    %c0_7 = arith.constant 0 : index
    %9 = vector.load %arg10[%c6, %c0_7] : memref<24x128xf32, #tpu.memory_space<vmem>>, vector<16x128xf32>
    %c128 = arith.constant 128 : index
    %c0_8 = arith.constant 0 : index
    %10 = vector.load %arg3[%c128, %c0_8] : memref<384x128xf32, #tpu.memory_space<vmem>>, vector<128x128xf32>
    %cst_9 = arith.constant dense<0.000000e+00> : vector<16x128xf32>
    %11 = tpu.matmul %9, %10, %cst_9 {dimension_numbers = #tpu.dot_dimension_numbers<[1], [0], [0], [1], [0, 0, 1, 1], [], []>} : vector<16x128xf32>, vector<128x128xf32>, vector<16x128xf32> -> vector<16x128xf32>
    %12 = arith.addf %8, %11 : vector<16x128xf32>
    %c8_10 = arith.constant 8 : index
    %c0_11 = arith.constant 0 : index
    %13 = vector.load %arg10[%c8_10, %c0_11] : memref<24x128xf32, #tpu.memory_space<vmem>>, vector<16x128xf32>
    %c256 = arith.constant 256 : index
    %c0_12 = arith.constant 0 : index
    %14 = vector.load %arg3[%c256, %c0_12] : memref<384x128xf32, #tpu.memory_space<vmem>>, vector<128x128xf32>
    %cst_13 = arith.constant dense<0.000000e+00> : vector<16x128xf32>
    %15 = tpu.matmul %13, %14, %cst_13 {dimension_numbers = #tpu.dot_dimension_numbers<[1], [0], [0], [1], [0, 0, 1, 1], [], []>} : vector<16x128xf32>, vector<128x128xf32>, vector<16x128xf32> -> vector<16x128xf32>
    %16 = arith.addf %12, %15 : vector<16x128xf32>
    %c0_14 = arith.constant 0 : index
    %c0_15 = arith.constant 0 : index
    %17 = vector.load %arg4[%c0_14, %c0_15] : memref<1x128xf32, #tpu.memory_space<vmem>>, vector<1x128xf32>
    %18 = vector.broadcast %17 : vector<1x128xf32> to vector<16x128xf32>
    %19 = arith.addf %16, %18 : vector<16x128xf32>
    %cst_16 = arith.constant 0.000000e+00 : f32
    %20 = vector.broadcast %cst_16 : f32 to vector<16x128xf32>
    %21 = arith.maximumf %19, %20 : vector<16x128xf32>
    %c8_17 = arith.constant 8 : index
    %c0_18 = arith.constant 0 : index
    %22 = vector.load %arg11[%c8_17, %c0_18] : memref<24x128xf32, #tpu.memory_space<vmem>>, vector<16x128xf32>
    tpu.vector_store %arg11[%c8_17, %c0_18], %21 {strides = array<i32>} : memref<24x128xf32, #tpu.memory_space<vmem>>, vector<16x128xf32>,
    %c4_19 = arith.constant 4 : index
    %c0_20 = arith.constant 0 : index
    %23 = vector.load %arg11[%c4_19, %c0_20] : memref<24x128xf32, #tpu.memory_space<vmem>>, vector<16x128xf32>
    %c0_21 = arith.constant 0 : index
    %c0_22 = arith.constant 0 : index
    %24 = vector.load %arg5[%c0_21, %c0_22] : memref<384x128xf32, #tpu.memory_space<vmem>>, vector<128x128xf32>
    %cst_23 = arith.constant dense<0.000000e+00> : vector<16x128xf32>
    %25 = tpu.matmul %23, %24, %cst_23 {dimension_numbers = #tpu.dot_dimension_numbers<[1], [0], [0], [1], [0, 0, 1, 1], [], []>} : vector<16x128xf32>, vector<128x128xf32>, vector<16x128xf32> -> vector<16x128xf32>
    %c6_24 = arith.constant 6 : index
    %c0_25 = arith.constant 0 : index
    %26 = vector.load %arg11[%c6_24, %c0_25] : memref<24x128xf32, #tpu.memory_space<vmem>>, vector<16x128xf32>
    %c128_26 = arith.constant 128 : index
    %c0_27 = arith.constant 0 : index
    %27 = vector.load %arg5[%c128_26, %c0_27] : memref<384x128xf32, #tpu.memory_space<vmem>>, vector<128x128xf32>
    %cst_28 = arith.constant dense<0.000000e+00> : vector<16x128xf32>
    %28 = tpu.matmul %26, %27, %cst_28 {dimension_numbers = #tpu.dot_dimension_numbers<[1], [0], [0], [1], [0, 0, 1, 1], [], []>} : vector<16x128xf32>, vector<128x128xf32>, vector<16x128xf32> -> vector<16x128xf32>
    %29 = arith.addf %25, %28 : vector<16x128xf32>
    %c8_29 = arith.constant 8 : index
    %c0_30 = arith.constant 0 : index
    %30 = vector.load %arg11[%c8_29, %c0_30] : memref<24x128xf32, #tpu.memory_space<vmem>>, vector<16x128xf32>
    %c256_31 = arith.constant 256 : index
    %c0_32 = arith.constant 0 : index
    %31 = vector.load %arg5[%c256_31, %c0_32] : memref<384x128xf32, #tpu.memory_space<vmem>>, vector<128x128xf32>
    %cst_33 = arith.constant dense<0.000000e+00> : vector<16x128xf32>
    %32 = tpu.matmul %30, %31, %cst_33 {dimension_numbers = #tpu.dot_dimension_numbers<[1], [0], [0], [1], [0, 0, 1, 1], [], []>} : vector<16x128xf32>, vector<128x128xf32>, vector<16x128xf32> -> vector<16x128xf32>
    %33 = arith.addf %29, %32 : vector<16x128xf32>
    %c0_34 = arith.constant 0 : index
    %c0_35 = arith.constant 0 : index
    %34 = vector.load %arg6[%c0_34, %c0_35] : memref<1x128xf32, #tpu.memory_space<vmem>>, vector<1x128xf32>
    %35 = vector.broadcast %34 : vector<1x128xf32> to vector<16x128xf32>
    %36 = arith.addf %33, %35 : vector<16x128xf32>
    %cst_36 = arith.constant 0.000000e+00 : f32
    %37 = vector.broadcast %cst_36 : f32 to vector<16x128xf32>
    %38 = arith.maximumf %36, %37 : vector<16x128xf32>
    %c0_37 = arith.constant 0 : index
    %c0_38 = arith.constant 0 : index
    %39 = vector.load %arg7[%c0_37, %c0_38] : memref<128x128xf32, #tpu.memory_space<vmem>>, vector<128x128xf32>
    %cst_39 = arith.constant dense<0.000000e+00> : vector<16x128xf32>
    %40 = tpu.matmul %4, %39, %cst_39 {dimension_numbers = #tpu.dot_dimension_numbers<[1], [0], [0], [1], [0, 0, 1, 1], [], []>} : vector<16x128xf32>, vector<128x128xf32>, vector<16x128xf32> -> vector<16x128xf32>
    %c0_40 = arith.constant 0 : index
    %c0_41 = arith.constant 0 : index
    %41 = vector.load %arg8[%c0_40, %c0_41] : memref<1x128xf32, #tpu.memory_space<vmem>>, vector<1x128xf32>
    %42 = vector.broadcast %41 : vector<1x128xf32> to vector<16x128xf32>
    %43 = arith.addf %40, %42 : vector<16x128xf32>
    %44 = arith.addf %38, %43 : vector<16x128xf32>
    %cst_42 = arith.constant 0.000000e+00 : f32
    %45 = vector.broadcast %cst_42 : f32 to vector<16x128xf32>
    %46 = arith.maximumf %44, %45 : vector<16x128xf32>
    %c0_43 = arith.constant 0 : index
    %c0_44 = arith.constant 0 : index
    %c0_45 = arith.constant 0 : index
    %47 = vector.load %arg9[%c0_43, %c0_44, %c0_45] : memref<1x16x128xf32, #tpu.memory_space<vmem>>, vector<1x16x128xf32>
    %48 = vector.shape_cast %47 : vector<1x16x128xf32> to vector<16x128xf32>
    %49 = vector.shape_cast %46 : vector<16x128xf32> to vector<1x16x128xf32>
    tpu.vector_store %arg9[%c0_43, %c0_44, %c0_45], %49 {strides = array<i32>} : memref<1x16x128xf32, #tpu.memory_space<vmem>>, vector<1x16x128xf32>,
    %c20 = arith.constant 20 : index
    %c0_46 = arith.constant 0 : index
    %50 = vector.load %arg10[%c20, %c0_46] : memref<24x128xf32, #tpu.memory_space<vmem>>, vector<4x128xf32>
    %c4_47 = arith.constant 4 : index
    %c0_48 = arith.constant 0 : index
    %51 = vector.load %arg10[%c4_47, %c0_48] : memref<24x128xf32, #tpu.memory_space<vmem>>, vector<4x128xf32>
    tpu.vector_store %arg10[%c4_47, %c0_48], %50 {strides = array<i32>} : memref<24x128xf32, #tpu.memory_space<vmem>>, vector<4x128xf32>,
    %c20_49 = arith.constant 20 : index
    %c0_50 = arith.constant 0 : index
    %52 = vector.load %arg11[%c20_49, %c0_50] : memref<24x128xf32, #tpu.memory_space<vmem>>, vector<4x128xf32>
    %c4_51 = arith.constant 4 : index
    %c0_52 = arith.constant 0 : index
    %53 = vector.load %arg11[%c4_51, %c0_52] : memref<24x128xf32, #tpu.memory_space<vmem>>, vector<4x128xf32>
    tpu.vector_store %arg11[%c4_51, %c0_52], %52 {strides = array<i32>} : memref<24x128xf32, #tpu.memory_space<vmem>>, vector<4x128xf32>,
    return
  }
  func.func @transform_0(%arg0: i32, %arg1: i32) -> (i32, i32, i32) {
    %c0_i32 = arith.constant 0 : i32
    %c0_i32_0 = arith.constant 0 : i32
    return %arg0, %arg1, %c0_i32 : i32, i32, i32
  }
  func.func @transform_1(%arg0: i32, %arg1: i32) -> (i32, i32) {
    %c0_i32 = arith.constant 0 : i32
    %c0_i32_0 = arith.constant 0 : i32
    %c0_i32_1 = arith.constant 0 : i32
    return %c0_i32, %c0_i32_0 : i32, i32
  }
  func.func @transform_2(%arg0: i32, %arg1: i32) -> (i32, i32) {
    %c0_i32 = arith.constant 0 : i32
    %c0_i32_0 = arith.constant 0 : i32
    %c0_i32_1 = arith.constant 0 : i32
    return %c0_i32, %c0_i32_0 : i32, i32
  }
  func.func @transform_3(%arg0: i32, %arg1: i32) -> (i32, i32) {
    %c0_i32 = arith.constant 0 : i32
    %c0_i32_0 = arith.constant 0 : i32
    %c0_i32_1 = arith.constant 0 : i32
    return %c0_i32, %c0_i32_0 : i32, i32
  }
  func.func @transform_4(%arg0: i32, %arg1: i32) -> (i32, i32) {
    %c0_i32 = arith.constant 0 : i32
    %c0_i32_0 = arith.constant 0 : i32
    %c0_i32_1 = arith.constant 0 : i32
    return %c0_i32, %c0_i32_0 : i32, i32
  }
  func.func @transform_5(%arg0: i32, %arg1: i32) -> (i32, i32) {
    %c0_i32 = arith.constant 0 : i32
    %c0_i32_0 = arith.constant 0 : i32
    %c0_i32_1 = arith.constant 0 : i32
    return %c0_i32, %c0_i32_0 : i32, i32
  }
  func.func @transform_6(%arg0: i32, %arg1: i32) -> (i32, i32) {
    %c0_i32 = arith.constant 0 : i32
    %c0_i32_0 = arith.constant 0 : i32
    %c0_i32_1 = arith.constant 0 : i32
    return %c0_i32, %c0_i32_0 : i32, i32
  }
  func.func @transform_7(%arg0: i32, %arg1: i32) -> (i32, i32, i32) {
    %c0_i32 = arith.constant 0 : i32
    %c0_i32_0 = arith.constant 0 : i32
    return %arg0, %arg1, %c0_i32 : i32, i32, i32
  }
}

</mosaic_0001>

<bundles_post_ra>
// kernel: tpu_custom_call.1
= control target key start
LH: loop header
LB: loop body
LE: loop exit
PB: predicated region body
PF: predicated region fallthrough
CT: control target
= control target key end

     0   :  { %s2250_s0 = inlined_call_operand.hbm [shape: f32[2,64,128], index: 0, kind: input, shape index: {}]   ;;  %s2251_s1 = inlined_call_operand.hbm [shape: f32[384,128], index: 1, kind: input, shape index: {}]   ;;  %s2252_s2 = inlined_call_operand.vmem [shape: f32[1,128], index: 2, kind: input, shape index: {}]   ;;  %s2253_s3 = inlined_call_operand.hbm [shape: f32[384,128], index: 3, kind: input, shape index: {}]   ;;  %s2254_s4 = inlined_call_operand.vmem [shape: f32[1,128], index: 4, kind: input, shape index: {}]   ;;  %s2255_s5 = inlined_call_operand.hbm [shape: f32[128,128], index: 5, kind: input, shape index: {}]   ;;  %s2256_s6 = inlined_call_operand.vmem [shape: f32[1,128], index: 6, kind: input, shape index: {}]   ;;  %s2257_s7 = inlined_call_operand.hbm [shape: f32[2,64,128], index: 7, kind: output, shape index: {}]  }
   0x1   :  { %2267 = sst [smem:[#allocation22_spill]] %s2251_s1 }
   0x2   :  { %2268 = sst [smem:[#allocation23_spill]] %s2253_s3 }
   0x3   :  { %2269 = sst [smem:[#allocation24_spill]] %s2255_s5 }
   0x4   :  { %2270 = sst [smem:[#allocation25_spill]] %s2257_s7 }
   0x5   :  { %12 = vsyncpa [#allocation5], 0 }
   0x6   :  { %14 = vsyncpa [#allocation5 + $0x1], 0 }
   0x7   :  { %15 = vsyncpa [#allocation8], 0 }
   0x8   :  { %16 = vsyncpa [#allocation11], 0 }
   0x9   :  { %17 = vsyncpa [#allocation6], 0 }
   0xa   :  { %19 = vsyncpa [#allocation6 + $0x1], 0  ;;  %s1974_s24 = smov 0   ;;  %s1976_s25 = smov 0  }
   0xb   :  { %s1978_s26 = smov 0   ;;  %s1980_s27 = smov 0  }
   0xc   :  { %s1982_s28 = smov 0   ;;  %s1984_s29 = smov 0  }
   0xd   :  { %s1986_s30 = smov 0   ;;  %s1988_s8 = smov 0  }
   0xe LB: > { %2271 = sst [smem:[#allocation17_spill]] %s1894_s24  ;;  %s1200_s9 = sadd.s32 4294967295, %s1922_s8   ;;  %s1922_s8 = sphi %s1988_s8, %s25_s8   ;;  %s1918_s30 = sphi %s1986_s30, %s2302_s30   ;;  %s1914_s29 = sphi %s1984_s29, %s2297_s29   ;;  %s1910_s28 = sphi %s1982_s28, %s2301_s28   ;;  %s1906_s27 = sphi %s1980_s27, %s2296_s27   ;;  %s1902_s26 = sphi %s1978_s26, %s2300_s26   ;;  %s1898_s25 = sphi %s1976_s25, %s2299_s25   ;;  %s1894_s24 = sphi %s1974_s24, %s2298_s24  }
   0xf   : > { %2272 = sst [smem:[#allocation18_spill]] %s1914_s29  ;;  %s1201_s10 = sadd.s32 4294967294, %s1922_s8  }
  0x10   : > { %p59_p0 = scmp.ne.s32.totalorder %s1898_s25, %s1894_s24  ;;  %p2018_p1 = scmp.eq.s32.totalorder %s1200_s9, 0 }
  0x11   : > { %p2022_p2 = scmp.eq.s32.totalorder %s1200_s9, 7  ;;  %p217_p3 = scmp.eq.s32.totalorder %s1201_s10, 7 }
  0x12   : > { %p2028_p4 = por %p2018_p1, %p59_p0  ;;  %p1202_p5 = scmp.ge.s32.totalorder %s1922_s8, 1 }
  0x13   : > { %p2033_p6 = por %p217_p3, %p59_p0  ;;  %p224_p7 = scmp.lt.s32.totalorder %s1922_s8, 9 }
  0x14   : > { %s1924_s16 = smov [#allocation7]   ;;  %s1925_s19 = smov [#allocation9]  }
  0x15   : > { %s2276_s14 = scalar_select %p2033_p6, 1, 0 }
  0x16   : > { %p2038_p8 = pnand %p1202_p5, %p224_p7  ;;  %s236_s17 = sshll.u32 %s1924_s16, 4  ;;  %s237_s17 = int_to_ptr.vmem [resolvable:$true] %s236_s17 }
  0x17   : > { %2277 = sst [smem:[#allocation19_spill]] %s2276_s14  ;;  %s252_s20 = sshll.u32 %s1925_s19, 4  ;;  %s253_s20 = int_to_ptr.vmem [resolvable:$true] %s252_s20 }
  0x18   : > { %p1614_p9 = pneg %p2038_p8  ;;  %s1926_s21 = smov [#allocation10]  }
  0x19   : > { %s268_s22 = sshll.u32 %s1926_s21, 4  ;;  %s1723_s23 = scalar_lea.vmem %s237_s17, 6144  ;;  %s269_s22 = int_to_ptr.vmem [resolvable:$true] %s268_s22 }
  0x1a   : > { %p2046_p10 = pnand %p1614_p9, %p2018_p1  ;;  %p1724_p12 = scmp.ne.s32.totalorder %s237_s17, %s1723_s23 }
  0x1b   : > { %p1731_p3 = scmp.lt.s32.totalorder %s237_s17, %s237_s17  ;;  %p1732_p5 = scmp.lt.s32.totalorder %s1723_s23, %s1723_s23 }
  0x1c   : > { %p1714_p11 = pneg %p2046_p10 }
  0x1d   : > { %p1733_p7 = por %p1732_p5, %p1731_p3 }
  0x1e   : > { %p1726_p13 = pnand %p1724_p12, %p1714_p11 }
  0x20   : > { %p1727_p0 = pneg %p1726_p13 }
  0x22   : > { %p1734_p9 = pnand %p1733_p7, %p1727_p0 }
  0x24   : > { %1737 = shalt.err (!%p1734_p9)
}
  0x25   : > { %s2259_s9 = smov 128   ;;  %s2260_s10 = smov 8  }
  0x26   : > { %s2280_s1 = sld [smem:[#allocation22_spill]]  ;;  %s1749_s21 = scalar_lea.vmem %s253_s20, 6144 }
  0x27   : > { %p1750_p12 = scmp.ne.s32.totalorder %s253_s20, %s1749_s21  ;;  %p1757_p0 = scmp.lt.s32.totalorder %s253_s20, %s253_s20 }
  0x28   : > { %p1758_p5 = scmp.lt.s32.totalorder %s1749_s21, %s1749_s21 }
  0x29   : > { %p1752_p13 = pnand %p1750_p12, %p1714_p11 }
  0x2a   : > { %p1759_p7 = por %p1758_p5, %p1757_p0 }
  0x2b   : > { %p1753_p3 = pneg %p1752_p13 }
  0x2c   : > { %1617 = dma.hbm_to_vmem [thread:$0]  (!%p2046_p10), %s2280_s1, 6144, %s237_s17, [#allocation8], %s2259_s9, %s2259_s9, %s2260_s10  }
  0x2d   : > { %p1760_p9 = pnand %p1759_p7, %p1753_p3 }
  0x2f   : > { %1763 = shalt.err (!%p1760_p9)
}
  0x30   : > { %s2281_s3 = sld [smem:[#allocation23_spill]]  ;;  %s1775_s17 = scalar_lea.vmem %s269_s22, 2048 }
  0x31   : > { %p1776_p6 = scmp.ne.s32.totalorder %s269_s22, %s1775_s17  ;;  %p1783_p0 = scmp.lt.s32.totalorder %s269_s22, %s269_s22 }
  0x32   : > { %p1784_p3 = scmp.lt.s32.totalorder %s1775_s17, %s1775_s17 }
  0x33   : > { %p1778_p12 = pnand %p1776_p6, %p1714_p11 }
  0x34   : > { %p1785_p5 = por %p1784_p3, %p1783_p0 }
  0x35   : > { %p1779_p13 = pneg %p1778_p12 }
  0x36   : > { %1620 = dma.hbm_to_vmem [thread:$0]  (!%p2046_p10), %s2281_s3, 6144, %s253_s20, [#allocation8], %s2259_s9, %s2259_s9, %s2260_s10  }
  0x37   : > { %p1786_p7 = pnand %p1785_p5, %p1779_p13 }
  0x39   : > { %1789 = shalt.err (!%p1786_p7)
}
  0x3a   : > { %s2282_s5 = sld [smem:[#allocation24_spill]]  ;;  %s34_s18 = sadd.s32 1, %s1914_s29 }
  0x3b   : > { %p35_p6 = scmp.ge.s32.totalorder %s34_s18, 4  ;;  %s37_s20 = sadd.s32 1, %s1918_s30 }
  0x3c   : > { %s46_s19 = sadd.s32 1, %s1902_s26  ;;  %p53_p11 = scmp.ne.s32.totalorder %s1902_s26, %s1898_s25 }
  0x3d   : > { %s2304_s18 = smov (%p35_p6, %s34_s18), 0  ;;  %s2306_s20 = smov (!%p35_p6, %s37_s20), %s1918_s30 }
  0x3e   : > { %2283 = sst [smem:[#allocation20_spill]] %s2304_s18  ;;  %s42_s21 = ssub.s32 %s1914_s29, %s2304_s18 }
  0x3f   : > { %p54_p9 = scmp.eq.s32.totalorder %s1922_s8, 0  ;;  %p39_p12 = scmp.ge.s32.totalorder %s2306_s20, 2 }
  0x40   : > { %1623 = dma.hbm_to_vmem [thread:$0]  (!%p2046_p10), %s2282_s5, 2048, %s269_s22, [#allocation11], %s2259_s9, %s2259_s9, %s2260_s10  }
  0x41   : > { %p2098_p13 = por %p2022_p2, %p53_p11  ;;  %p2102_p10 = por %p54_p9, %p53_p11 }
  0x42   : > { %p1635_p0 = scmp.lt.s32.totalorder %s1922_s8, 8  ;;  %s2308_s20 = smov (%p39_p12, %s2306_s20), 0 }
  0x43   : > { %s2284_s23 = scalar_select %p2098_p13, 1, 0 }
  0x44   : > { %s285_s17 = sand.u32 1, %s1902_s26   ;;  %s1208_s14 = sshll.u32 %s1914_s29, 1 }
  0x45   : > { %2285 = sst [smem:[#allocation21_spill]] %s2284_s23  ;;  %s41_s16 = ssub.s32 %s1918_s30, %s2308_s20 }
  0x46   : > { %s43_s9 = sor.u32 %s42_s21, %s41_s16  ;;  %s1207_s10 = sshll.u32 %s285_s17, 4 }
  0x47   : > { %p44_p3 = scmp.eq.s32.totalorder %s43_s9, 0  ;;  %s1209_s12 = sshll.u32 %s1918_s30, 3 }
  0x48   : > { %s289_s1 = scalar_lea.vmem [#allocation4], %s1207_s10  ;;  %s295_s18 = sadd.s32 %s1209_s12, %s1208_s14 }
  0x49   : > { %s298_s3 = sshll.u32 %s289_s1, 4  ;;  %s1210_s24 = sshll.u32 %s295_s18, 7  ;;  %s299_s3 = int_to_ptr.vmem [resolvable:$true] %s298_s3 }
  0x4a   : > { %s2115_s5 = scalar_select %p44_p3, %s1902_s26, %s46_s19  }
  0x4b   : > { %p2121_p2 = pnand %p1635_p0, %p2102_p10  ;;  %s297_s21 = scalar_lea.hbm %s2250_s0, %s1210_s24 }
  0x4c   : > { %s286_s9 = scalar_lea.sflag [#allocation5], %s285_s17  ;;  %s1803_s1 = scalar_lea.vmem %s299_s3, 256 }
  0x4d   : > { %p1792_p5 = pneg %p2121_p2  ;;  %p1804_p7 = scmp.ne.s32.totalorder %s299_s3, %s1803_s1 }
  0x4e   : > { %s1929_s10 = smov [#allocation4]  }
  0x4f   : > { %p1806_p6 = pnand %p1804_p7, %p1792_p5  ;;  %s1808_s18 = sshll.u32 %s1929_s10, 4  ;;  %s1809_s18 = int_to_ptr.vmem [resolvable:$false] %s1808_s18 }
  0x50   : > { %s1810_s19 = scalar_lea.vmem %s1809_s18, 512  ;;  %p1811_p9 = scmp.lt.s32.totalorder %s299_s3, %s1809_s18 }
  0x51   : > { %p1807_p11 = pneg %p1806_p6  ;;  %p1812_p12 = scmp.lt.s32.totalorder %s1810_s19, %s1803_s1 }
  0x53   : > { %p1813_p10 = por %p1812_p12, %p1811_p9 }
  0x55   : > { %p1814_p0 = pnand %p1813_p10, %p1807_p11 }
  0x57   : > { %1817 = shalt.err (!%p1814_p0)
}
  0x58   : > { %s2288_s29 = smov 8   ;;  %s2289_s24 = smov 128  }
  0x59   : > { %1627 = dma.hbm_to_vmem [thread:$0]  (!%p2121_p2), %s297_s21, 256, %s299_s3, %s286_s9, %s2289_s24, %s2289_s24, %s2288_s29  }
  0x5a   : > { %310 = sbr.rel (%p2038_p8) target bundleno = 637 (0x27d), region = 48  ;;  %s2138_s23 = sand.u32 (!%p2038_p8), 1, %s1898_s25  }
  0x5b   : > { %s1212_s22 = sshll.u32 (!%p2038_p8), %s2138_s23, 4  ;;  %s313_s17 = scalar_lea.sflag (!%p2038_p8), [#allocation5], %s2138_s23 }
  0x5c   : > { %s2142_s14 = scalar_lea.vmem (!%p2038_p8), [#allocation4], %s1212_s22 }
  0x5f   : > { %1877 = dma.done.wait (%p2028_p4), %s313_s17, 256  }
  0x60   : > { %1879 = vsyncadd (%p2028_p4), %s313_s17, 4294967040 }
  0x61   : > { %1881 = dma.done.wait (%p2018_p1), [#allocation8], 12288  }
  0x62   : > { %1883 = vsyncadd (%p2018_p1), [#allocation8], 4294955008 }
  0x63   : > { %1885 = dma.done.wait (%p2018_p1), [#allocation11], 2048  }
  0x64   : > { %1887 = vsyncadd (%p2018_p1), [#allocation11], 4294965248  ;;  %s2156_s3 = scalar_lea.vmem [#allocation12], %s1212_s22  ;;  %p1217_p8 = scmp.ne.s32.totalorder %s1906_s27, 0 }
  0x66   : > { %364 = sbr.rel (%p1217_p8) target bundleno = 109 (0x6d), region = 68 }
  0x6b   : > { %v1930_v0 = vmov 0.0  }
  0x6c   : > { %365 = vst [vmem:[#allocation2] sm:$0xff] %v1930_v0  ;;  %366 = vst [vmem:[#allocation3] sm:$0xff] %v1930_v0 }
  0x6d PF: > { %v406_v1 = vld [vmem:[#allocation7 + $0xf8] sm:$0xff]  ;;  %v405_v3 = vld [vmem:[#allocation7 + $0xf0] sm:$0xff]  ;;  %v404_v5 = vld [vmem:[#allocation7 + $0xe8] sm:$0xff]  ;;  %s1222_s21 = sshll.u32 %s1906_s27, 1  ;;  %s1223_s9 = sshll.u32 %s1910_s28, 3 }
  0x6e   : > { %v388_v2 = vld [vmem:[#allocation7 + $0x78] sm:$0xff]  ;;  %1353 = vmatprep.subr.mxu0 %v406_v1  ;;  %v387_v4 = vld [vmem:[#allocation7 + $0x70] sm:$0xff]  ;;  %v386_v6 = vld [vmem:[#allocation7 + $0x68] sm:$0xff]  ;;  %s1078_s1 = sadd.s32 %s1223_s9, %s1222_s21  ;;  %s1081_s19 = sshll.u32 %s2156_s3, 4  ;;  %s2195_s19 = int_to_ptr.vmem [resolvable:$true] %s1081_s19 }
  0x6f   : > { %1388 = vmatprep.subr.mxu1 %v388_v2  ;;  %1354 = vmatpush3.msra.mxu0 %v406_v1  ;;  %v403_v7 = vld [vmem:[#allocation7 + $0xe0] sm:$0xff]  ;;  %v402_v9 = vld [vmem:[#allocation7 + $0xd8] sm:$0xff]  ;;  %v401_v11 = vld [vmem:[#allocation7 + $0xd0] sm:$0xff]  ;;  %s1224_s18 = sshll.u32 %s1078_s1, 7  ;;  %s2291_s29 = sld [smem:[#allocation25_spill]] }
  0x70   : > { %1389 = vmatpush3.msra.mxu1 %v388_v2  ;;  %1355 = vmatprep.subr.mxu0 %v405_v3  ;;  %v385_v8 = vld [vmem:[#allocation7 + $0x60] sm:$0xff]  ;;  %v384_v10 = vld [vmem:[#allocation7 + $0x58] sm:$0xff]  ;;  %v383_v12 = vld [vmem:[#allocation7 + $0x50] sm:$0xff]  ;;  %s1066_s17 = scalar_lea.sflag [#allocation6], %s2138_s23  ;;  %s1931_s7 = smov [#allocation12]  }
  0x71   : > { %1390 = vmatprep.subr.mxu1 %v387_v4  ;;  %1356 = vmatpush3.msra.mxu0 %v405_v3  ;;  %v400_v13 = vld [vmem:[#allocation7 + $0xc8] sm:$0xff]  ;;  %v2160_v15 = vld [vmem:[%s2142_s14] sm:$0xff]  ;;  %v398_v19 = vld [vmem:[#allocation7 + $0xb8] sm:$0xff]  ;;  %s1822_s11 = sshll.u32 %s1931_s7, 4  ;;  %s1823_s11 = int_to_ptr.vmem [resolvable:$false] %s1822_s11 }
  0x72   : > { %1391 = vmatpush3.msra.mxu1 %v387_v4  ;;  %1357 = vmatprep.subr.mxu0 %v404_v5  ;;  %v382_v14 = vld [vmem:[#allocation7 + $0x48] sm:$0xff]  ;;  %369 = vst [vmem:[#allocation2 + $0x8] sm:$0xff] %v2160_v15  ;;  %v399_v17 = vld [vmem:[#allocation7 + $0xc0] sm:$0xff]  ;;  %v380_v20 = vld [vmem:[#allocation7 + $0x38] sm:$0xff]  ;;  %s1824_s13 = scalar_lea.vmem %s1823_s11, 512  ;;  %p1825_p2 = scmp.lt.s32.totalorder %s2195_s19, %s1823_s11 }
  0x73   : > { %1392 = vmatprep.subr.mxu1 %v386_v6  ;;  %1358 = vmatpush3.msra.mxu0 %v404_v5  ;;  %v2164_v16 = vld [vmem:[%s2142_s14 + $0x8] sm:$0xff]  ;;  %v381_v18 = vld [vmem:[#allocation7 + $0x40] sm:$0xff]  ;;  %v397_v21 = vld [vmem:[#allocation7 + $0xb0] sm:$0xff]  ;;  %s1818_s14 = scalar_lea.vmem %s2195_s19, 256 }
  0x74   : > { %1393 = vmatpush3.msra.mxu1 %v386_v6  ;;  %1359 = vmatprep.subr.mxu0 %v403_v7  ;;  %370 = vst [vmem:[#allocation2 + $0x10] sm:$0xff] %v2164_v16  ;;  %v379_v22 = vld [vmem:[#allocation7 + $0x30] sm:$0xff]  ;;  %v396_v23 = vld [vmem:[#allocation7 + $0xa8] sm:$0xff]  ;;  %v395_v28 = vld [vmem:[#allocation7 + $0xa0] sm:$0xff]  ;;  %p1819_p1 = scmp.ne.s32.totalorder %s2195_s19, %s1818_s14  ;;  %p1826_p5 = scmp.lt.s32.totalorder %s1824_s13, %s1818_s14 }
  0x75   : > { %1394 = vmatprep.subr.mxu1 %v385_v8  ;;  %1360 = vmatpush3.msra.mxu0 %v403_v7  ;;  %v378_v24 = vld [vmem:[#allocation7 + $0x28] sm:$0xff]  ;;  %v377_v29 = vld [vmem:[#allocation7 + $0x20] sm:$0xff]  ;;  %v394_v30 = vld [vmem:[#allocation7 + $0x98] sm:$0xff]  ;;  %s2292_s22 = smov %s2291_s29  ;;  %s2193_s24 = scalar_lea.hbm %s2291_s29, %s1224_s18 }
  0x76   : > { %1395 = vmatpush3.msra.mxu1 %v385_v8  ;;  %1361 = vmatprep.subr.mxu0 %v402_v9  ;;  %v376_v31 = vld [vmem:[#allocation7 + $0x18] sm:$0xff]  ;;  %v393_v32 = vld [vmem:[#allocation7 + $0x90] sm:$0xff]  ;;  %v392_v34 = vld [vmem:[#allocation7 + $0x88] sm:$0xff]  ;;  %p1820_p4 = pnand %p1819_p1, %p2098_p13  ;;  %p1827_p7 = por %p1826_p5, %p1825_p2 }
  0x77   : > { %1396 = vmatprep.subr.mxu1 %v384_v10  ;;  %1362 = vmatpush3.msra.mxu0 %v402_v9  ;;  %v375_v33 = vld [vmem:[#allocation7 + $0x10] sm:$0xff]  ;;  %v374_v35 = vld [vmem:[#allocation7 + $0x8] sm:$0xff]  ;;  %v391_v36 = vld [vmem:[#allocation7 + $0x80] sm:$0xff] }
  0x78   : > { %1397 = vmatpush3.msra.mxu1 %v384_v10  ;;  %1363 = vmatprep.subr.mxu0 %v401_v11  ;;  %v373_v37 = vld [vmem:[#allocation7] sm:$0xff]  ;;  %v574_v40 = vld [vmem:[#allocation7 + $0x178] sm:$0xff]  ;;  %v573_v41 = vld [vmem:[#allocation7 + $0x170] sm:$0xff]  ;;  %p1821_p3 = pneg %p1820_p4 }
  0x79   : > { %1398 = vmatprep.subr.mxu1 %v383_v12  ;;  %1364 = vmatpush3.msra.mxu0 %v401_v11  ;;  %v389_v25 = vld [vmem:[#allocation2 + $0x6] sm:$0xff]  ;;  %v572_v42 = vld [vmem:[#allocation7 + $0x168] sm:$0xff]  ;;  %v571_v43 = vld [vmem:[#allocation7 + $0x160] sm:$0xff] }
  0x7a   : > { %1399 = vmatpush3.msra.mxu1 %v383_v12  ;;  %1365 = vmatprep.subr.mxu0 %v400_v13  ;;  %v371_v26 = vld [vmem:[#allocation2 + $0x4] sm:$0xff]  ;;  %v568_v46 = vld [vmem:[#allocation7 + $0x148] sm:$0xff]  ;;  %v567_v47 = vld [vmem:[#allocation7 + $0x140] sm:$0xff]  ;;  %p1828_p6 = pnand %p1827_p7, %p1821_p3 }
  0x7b   : > { %1400 = vmatprep.subr.mxu1 %v382_v14  ;;  %1366 = vmatpush3.msra.mxu0 %v400_v13  ;;  %v1061_v27 = vld [vmem:[#allocation2 + $0x14] sm:$0xf]  ;;  %v372_v39 = vld [vmem:[#allocation2 + $0xc] sm:$0xff]  ;;  %v569_v45 = vld [vmem:[#allocation7 + $0x150] sm:$0xff] }
  0x7c   : > { %1401 = vmatpush3.msra.mxu1 %v382_v14  ;;  %1367 = vmatprep.subr.mxu0 %v399_v17  ;;  %1062 = vst [vmem:[#allocation2 + $0x4] sm:$0xf] %v1061_v27  ;;  %v390_v38 = vld [vmem:[#allocation2 + $0xe] sm:$0xff]  ;;  %v565_v49 = vld [vmem:[#allocation7 + $0x130] sm:$0xff]  ;;  %v564_v50 = vld [vmem:[#allocation7 + $0x128] sm:$0xff] }
  0x7d   : > { %1402 = vmatprep.subr.mxu1 %v381_v18  ;;  %1368 = vmatpush3.msra.mxu0 %v399_v17  ;;  %v570_v44 = vld [vmem:[#allocation7 + $0x158] sm:$0xff]  ;;  %v563_v51 = vld [vmem:[#allocation7 + $0x120] sm:$0xff]  ;;  %v561_v53 = vld [vmem:[#allocation7 + $0x110] sm:$0xff] }
  0x7e   : > { %1403 = vmatpush3.msra.mxu1 %v381_v18  ;;  %1369 = vmatprep.subr.mxu0 %v398_v19  ;;  %v566_v48 = vld [vmem:[#allocation7 + $0x138] sm:$0xff]  ;;  %v560_v54 = vld [vmem:[#allocation7 + $0x108] sm:$0xff]  ;;  %v559_v55 = vld [vmem:[#allocation7 + $0x100] sm:$0xff] }
  0x7f   : > { %1404 = vmatprep.subr.mxu1 %v380_v20  ;;  %1370 = vmatpush3.msra.mxu0 %v398_v19  ;;  %v562_v52 = vld [vmem:[#allocation7 + $0x118] sm:$0xff]  ;;  %v699_v58 = vld [vmem:[#allocation9 + $0xf0] sm:$0xff]  ;;  %v698_v60 = vld [vmem:[#allocation9 + $0xe8] sm:$0xff] }
  0x80   : > { %1405 = vmatpush3.msra.mxu1 %v380_v20  ;;  %1371 = vmatprep.subr.mxu0 %v397_v21  ;;  %v700_v56 = vld [vmem:[#allocation9 + $0xf8] sm:$0xff]  ;;  %v681_v59 = vld [vmem:[#allocation9 + $0x70] sm:$0xff]  ;;  %v680_v61 = vld [vmem:[#allocation9 + $0x68] sm:$0xff] }
  0x81   : > { %1406 = vmatprep.subr.mxu1 %v379_v22  ;;  %1372 = vmatpush3.msra.mxu0 %v397_v21  ;;  %v682_v57 = vld [vmem:[#allocation9 + $0x78] sm:$0xff]  ;;  %v697_v62 = vld [vmem:[#allocation9 + $0xe0] sm:$0xff]  ;;  %v695_v2 = vld [vmem:[#allocation9 + $0xd0] sm:$0xff] }
  0x82   : > { %1407 = vmatpush3.msra.mxu1 %v379_v22  ;;  %1373 = vmatprep.subr.mxu0 %v396_v23  ;;  %v679_v63 = vld [vmem:[#allocation9 + $0x60] sm:$0xff]  ;;  %v696_v0 = vld [vmem:[#allocation9 + $0xd8] sm:$0xff]  ;;  %v677_v3 = vld [vmem:[#allocation9 + $0x50] sm:$0xff] }
  0x83   : > { %1408 = vmatprep.subr.mxu1 %v378_v24  ;;  %1374 = vmatpush3.msra.mxu0 %v396_v23  ;;  %v678_v1 = vld [vmem:[#allocation9 + $0x58] sm:$0xff]  ;;  %v694_v4 = vld [vmem:[#allocation9 + $0xc8] sm:$0xff]  ;;  %v693_v6 = vld [vmem:[#allocation9 + $0xc0] sm:$0xff] }
  0x84   : > { %1409 = vmatpush3.msra.mxu1 %v378_v24  ;;  %1375 = vmatprep.subr.mxu0 %v395_v28  ;;  %v676_v5 = vld [vmem:[#allocation9 + $0x48] sm:$0xff]  ;;  %v675_v7 = vld [vmem:[#allocation9 + $0x40] sm:$0xff]  ;;  %v692_v8 = vld [vmem:[#allocation9 + $0xb8] sm:$0xff] }
  0x85   : > { %1410 = vmatprep.subr.mxu1 %v377_v29  ;;  %1376 = vmatpush3.msra.mxu0 %v395_v28  ;;  %v674_v9 = vld [vmem:[#allocation9 + $0x38] sm:$0xff]  ;;  %v691_v10 = vld [vmem:[#allocation9 + $0xb0] sm:$0xff]  ;;  %v690_v12 = vld [vmem:[#allocation9 + $0xa8] sm:$0xff] }
  0x86   : > { %1411 = vmatpush3.msra.mxu1 %v377_v29  ;;  %1377 = vmatprep.subr.mxu0 %v394_v30  ;;  %v673_v11 = vld [vmem:[#allocation9 + $0x30] sm:$0xff]  ;;  %v672_v13 = vld [vmem:[#allocation9 + $0x28] sm:$0xff]  ;;  %v689_v14 = vld [vmem:[#allocation9 + $0xa0] sm:$0xff] }
  0x87   : > { %1412 = vmatprep.subr.mxu1 %v376_v31  ;;  %1378 = vmatpush3.msra.mxu0 %v394_v30  ;;  %v671_v17 = vld [vmem:[#allocation9 + $0x20] sm:$0xff]  ;;  %v688_v18 = vld [vmem:[#allocation9 + $0x98] sm:$0xff]  ;;  %v687_v20 = vld [vmem:[#allocation9 + $0x90] sm:$0xff] }
  0x88   : > { %1413 = vmatpush3.msra.mxu1 %v376_v31  ;;  %1379 = vmatprep.subr.mxu0 %v393_v32  ;;  %v670_v19 = vld [vmem:[#allocation9 + $0x18] sm:$0xff]  ;;  %v669_v21 = vld [vmem:[#allocation9 + $0x10] sm:$0xff]  ;;  %v686_v22 = vld [vmem:[#allocation9 + $0x88] sm:$0xff] }
  0x89   : > { %1414 = vmatprep.subr.mxu1 %v375_v33  ;;  %1380 = vmatpush3.msra.mxu0 %v393_v32  ;;  %v668_v23 = vld [vmem:[#allocation9 + $0x8] sm:$0xff]  ;;  %v685_v24 = vld [vmem:[#allocation9 + $0x80] sm:$0xff]  ;;  %v972_v27 = vld [vmem:[#allocation10 + $0x78] sm:$0xff] }
  0x8a   : > { %1415 = vmatpush3.msra.mxu1 %v375_v33  ;;  %1381 = vmatprep.subr.mxu0 %v392_v34 }
  0x8b   : > { %1416 = vmatprep.subr.mxu1 %v374_v35  ;;  %1382 = vmatpush3.msra.mxu0 %v392_v34  ;;  %v1218_v34 = vld [vmem:[%s2252_s2] ss:$0 sm:$0xff] }
  0x8c   : > { %1417 = vmatpush3.msra.mxu1 %v374_v35  ;;  %1383 = vmatprep.subr.mxu0 %v391_v36 }
  0x8d   : > { %1418 = vmatprep.subr.mxu1 %v373_v37  ;;  %1384 = vmatpush3.msra.mxu0 %v391_v36 }
  0x8e   : > { %1385 = vmatprep.mubr.f32.mxu0 %v389_v25  ;;  %1419 = vmatpush3.msra.mxu1 %v373_v37  ;;  %v667_v25 = vld [vmem:[#allocation9] sm:$0xff] }
  0x8f   : > { %1420 = vmatprep.mubr.f32.mxu1 %v371_v26  ;;  %1386 = vmatmul.mubr.f32.vlgmr.msra.gmra.mxu0 %v390_v38  ;;  %v868_v26 = vld [vmem:[#allocation9 + $0x178] sm:$0xff] }
  0x90   : > { %1421 = vmatmul.mubr.f32.vlgmr.msra.gmra.mxu1 %v372_v39  ;;  %1423 = vmatprep.subr.mxu0 %v574_v40 }
  0x91   : > { %1455 = vmatprep.mubr.f32.mxu0 %v2160_v15  ;;  %1424 = vmatpush3.msra.mxu0 %v574_v40 }
  0x92   : > { %1425 = vmatprep.subr.mxu0 %v573_v41  ;;  %1458 = vmatprep.subr.mxu1 %v700_v56 }
  0x93   : > { %1426 = vmatpush3.msra.mxu0 %v573_v41  ;;  %1459 = vmatpush3.msra.mxu1 %v700_v56  ;;  %v863_v56 = vld [vmem:[#allocation9 + $0x150] sm:$0xff] }
  0x94   : > { %1427 = vmatprep.subr.mxu0 %v572_v42  ;;  %1460 = vmatprep.subr.mxu1 %v699_v58 }
  0x95   : > { %1428 = vmatpush3.msra.mxu0 %v572_v42  ;;  %1461 = vmatpush3.msra.mxu1 %v699_v58  ;;  %v862_v58 = vld [vmem:[#allocation9 + $0x148] sm:$0xff] }
  0x96   : > { %1429 = vmatprep.subr.mxu0 %v571_v43  ;;  %1462 = vmatprep.subr.mxu1 %v698_v60 }
  0x97   : > { %1430 = vmatpush3.msra.mxu0 %v571_v43  ;;  %1463 = vmatpush3.msra.mxu1 %v698_v60  ;;  %v861_v60 = vld [vmem:[#allocation9 + $0x140] sm:$0xff] }
  0x98   : > { %1431 = vmatprep.subr.mxu0 %v570_v44  ;;  %1464 = vmatprep.subr.mxu1 %v697_v62 }
  0x99   : > { %1432 = vmatpush3.msra.mxu0 %v570_v44  ;;  %1465 = vmatpush3.msra.mxu1 %v697_v62  ;;  %v860_v62 = vld [vmem:[#allocation9 + $0x138] sm:$0xff] }
  0x9a   : > { %1433 = vmatprep.subr.mxu0 %v569_v45  ;;  %1466 = vmatprep.subr.mxu1 %v696_v0 }
  0x9b   : > { %1434 = vmatpush3.msra.mxu0 %v569_v45  ;;  %1467 = vmatpush3.msra.mxu1 %v696_v0  ;;  %v859_v0 = vld [vmem:[#allocation9 + $0x130] sm:$0xff] }
  0x9c   : > { %1435 = vmatprep.subr.mxu0 %v568_v46  ;;  %1468 = vmatprep.subr.mxu1 %v695_v2 }
  0x9d   : > { %1436 = vmatpush3.msra.mxu0 %v568_v46  ;;  %1469 = vmatpush3.msra.mxu1 %v695_v2  ;;  %v858_v2 = vld [vmem:[#allocation9 + $0x128] sm:$0xff] }
  0x9e   : > { %1437 = vmatprep.subr.mxu0 %v567_v47  ;;  %1470 = vmatprep.subr.mxu1 %v694_v4 }
  0x9f   : > { %1438 = vmatpush3.msra.mxu0 %v567_v47  ;;  %1471 = vmatpush3.msra.mxu1 %v694_v4  ;;  %v857_v4 = vld [vmem:[#allocation9 + $0x120] sm:$0xff] }
  0xa0   : > { %1439 = vmatprep.subr.mxu0 %v566_v48  ;;  %1472 = vmatprep.subr.mxu1 %v693_v6 }
  0xa1   : > { %1440 = vmatpush3.msra.mxu0 %v566_v48  ;;  %1473 = vmatpush3.msra.mxu1 %v693_v6  ;;  %v867_v48 = vld [vmem:[#allocation9 + $0x170] sm:$0xff]  ;;  %v856_v6 = vld [vmem:[#allocation9 + $0x118] sm:$0xff] }
  0xa2   : > { %1441 = vmatprep.subr.mxu0 %v565_v49  ;;  %1474 = vmatprep.subr.mxu1 %v692_v8 }
  0xa3   : > { %1442 = vmatpush3.msra.mxu0 %v565_v49  ;;  %1475 = vmatpush3.msra.mxu1 %v692_v8  ;;  %v971_v49 = vld [vmem:[#allocation10 + $0x70] sm:$0xff] }
  0xa4   : > { %1443 = vmatprep.subr.mxu0 %v564_v50  ;;  %1476 = vmatprep.subr.mxu1 %v691_v10  ;;  %v855_v8 = vld [vmem:[#allocation9 + $0x110] sm:$0xff] }
  0xa5   : > { %1444 = vmatpush3.msra.mxu0 %v564_v50  ;;  %1477 = vmatpush3.msra.mxu1 %v691_v10  ;;  %v866_v50 = vld [vmem:[#allocation9 + $0x168] sm:$0xff] }
  0xa6   : > { %1445 = vmatprep.subr.mxu0 %v563_v51  ;;  %1478 = vmatprep.subr.mxu1 %v690_v12  ;;  %v854_v10 = vld [vmem:[#allocation9 + $0x108] sm:$0xff] }
  0xa7   : > { %1446 = vmatpush3.msra.mxu0 %v563_v51  ;;  %1479 = vmatpush3.msra.mxu1 %v690_v12  ;;  %v970_v51 = vld [vmem:[#allocation10 + $0x68] sm:$0xff]  ;;  %v853_v12 = vld [vmem:[#allocation9 + $0x100] sm:$0xff] }
  0xa8   : > { %1447 = vmatprep.subr.mxu0 %v562_v52  ;;  %1480 = vmatprep.subr.mxu1 %v689_v14 }
  0xa9   : > { %1448 = vmatpush3.msra.mxu0 %v562_v52  ;;  %1481 = vmatpush3.msra.mxu1 %v689_v14  ;;  %v865_v52 = vld [vmem:[#allocation9 + $0x160] sm:$0xff] }
  0xaa   : > { %1449 = vmatprep.subr.mxu0 %v561_v53  ;;  %1482 = vmatprep.subr.mxu1 %v688_v18 }
  0xab   : > { %1450 = vmatpush3.msra.mxu0 %v561_v53  ;;  %1483 = vmatpush3.msra.mxu1 %v688_v18  ;;  %v969_v53 = vld [vmem:[#allocation10 + $0x60] sm:$0xff] }
  0xac   : > { %1451 = vmatprep.subr.mxu0 %v560_v54  ;;  %1484 = vmatprep.subr.mxu1 %v687_v20 }
  0xad   : > { %1452 = vmatpush3.msra.mxu0 %v560_v54  ;;  %1485 = vmatpush3.msra.mxu1 %v687_v20  ;;  %v864_v54 = vld [vmem:[#allocation9 + $0x158] sm:$0xff] }
  0xae   : > { %1453 = vmatprep.subr.mxu0 %v559_v55  ;;  %1486 = vmatprep.subr.mxu1 %v686_v22 }
  0xaf   : > { %1454 = vmatpush3.msra.mxu0 %v559_v55  ;;  %1487 = vmatpush3.msra.mxu1 %v686_v22  ;;  %v968_v55 = vld [vmem:[#allocation10 + $0x58] sm:$0xff]  ;;  %v1219_v22 = vld [vmem:[%s2254_s4] ss:$0 sm:$0xff] }
  0xb0   : > { %1456 = vmatmul.mubr.f32.vlgmr.msra.gmra.mxu0 %v2164_v16  ;;  %1493 = vmatprep.subr.mxu0 %v682_v57 }
  0xb1   : > { %1494 = vmatpush3.msra.mxu0 %v682_v57  ;;  %1488 = vmatprep.subr.mxu1 %v685_v24  ;;  %v967_v57 = vld [vmem:[#allocation10 + $0x50] sm:$0xff] }
  0xb2   : > { %1495 = vmatprep.subr.mxu0 %v681_v59  ;;  %1489 = vmatpush3.msra.mxu1 %v685_v24 }
  0xb3   : > { %1496 = vmatpush3.msra.mxu0 %v681_v59  ;;  %1528 = vmatprep.subr.mxu1 %v868_v26  ;;  %v966_v59 = vld [vmem:[#allocation10 + $0x48] sm:$0xff] }
  0xb4   : > { %1497 = vmatprep.subr.mxu0 %v680_v61 }
  0xb5   : > { %1498 = vmatpush3.msra.mxu0 %v680_v61  ;;  %v965_v61 = vld [vmem:[#allocation10 + $0x40] sm:$0xff] }
  0xb6   : > { %1499 = vmatprep.subr.mxu0 %v679_v63 }
  0xb7   : > { %1500 = vmatpush3.msra.mxu0 %v679_v63  ;;  %v964_v63 = vld [vmem:[#allocation10 + $0x38] sm:$0xff] }
  0xb8   : > { %1501 = vmatprep.subr.mxu0 %v678_v1 }
  0xb9   : > { %1502 = vmatpush3.msra.mxu0 %v678_v1  ;;  %v963_v1 = vld [vmem:[#allocation10 + $0x30] sm:$0xff] }
  0xba   : > { %1503 = vmatprep.subr.mxu0 %v677_v3 }
  0xbb   : > { %1504 = vmatpush3.msra.mxu0 %v677_v3  ;;  %v962_v3 = vld [vmem:[#allocation10 + $0x28] sm:$0xff] }
  0xbc   : > { %1505 = vmatprep.subr.mxu0 %v676_v5 }
  0xbd   : > { %1506 = vmatpush3.msra.mxu0 %v676_v5  ;;  %v961_v5 = vld [vmem:[#allocation10 + $0x20] sm:$0xff] }
  0xbe   : > { %1507 = vmatprep.subr.mxu0 %v675_v7 }
  0xbf   : > { %1508 = vmatpush3.msra.mxu0 %v675_v7  ;;  %v960_v7 = vld [vmem:[#allocation10 + $0x18] sm:$0xff] }
  0xc0   : > { %1509 = vmatprep.subr.mxu0 %v674_v9 }
  0xc1   : > { %1510 = vmatpush3.msra.mxu0 %v674_v9  ;;  %v959_v9 = vld [vmem:[#allocation10 + $0x10] sm:$0xff] }
  0xc2   : > { %1511 = vmatprep.subr.mxu0 %v673_v11 }
  0xc3   : > { %1512 = vmatpush3.msra.mxu0 %v673_v11  ;;  %v958_v11 = vld [vmem:[#allocation10 + $0x8] sm:$0xff] }
  0xc4   : > { %1513 = vmatprep.subr.mxu0 %v672_v13 }
  0xc5   : > { %1514 = vmatpush3.msra.mxu0 %v672_v13  ;;  %v957_v13 = vld [vmem:[#allocation10] sm:$0xff] }
  0xc6   : > { %1515 = vmatprep.subr.mxu0 %v671_v17 }
  0xc7   : > { %1516 = vmatpush3.msra.mxu0 %v671_v17 }
  0xc8   : > { %1517 = vmatprep.subr.mxu0 %v670_v19 }
  0xc9   : > { %1518 = vmatpush3.msra.mxu0 %v670_v19 }
  0xca   : > { %1519 = vmatprep.subr.mxu0 %v669_v21 }
  0xcb   : > { %1520 = vmatpush3.msra.mxu0 %v669_v21 }
  0xcc   : > { %1521 = vmatprep.subr.mxu0 %v668_v23 }
  0xcd   : > { %1522 = vmatpush3.msra.mxu0 %v668_v23  ;;  %v1220_v23 = vld [vmem:[%s2256_s6] ss:$0 sm:$0xff] }
  0xce   : > { %1523 = vmatprep.subr.mxu0 %v667_v25 }
  0xcf   : > { %1524 = vmatpush3.msra.mxu0 %v667_v25 }
  0xd0   : > { %1563 = vmatprep.subr.mxu0 %v972_v27 }
 0x14f   : > { %v1387_v28 = vpop.f32.mrf.mxu0 }
 0x150   : > { %v1422_v29 = vpop.f32.mrf.mxu1 }
 0x151   : > { %v473_v30 = vpop.f32.mrf.mxu0  ;;  %v554_v32 = vadd.f32 %v1422_v29, %v1387_v28 }
 0x152   : > { %v548_v31 = vpop.f32.mrf.mxu1 }
 0x153   : > { %v549_v35 = vadd.f32 %v548_v31, %v473_v30 }
 0x170   : > { %v1457_v33 = vpop.f32.mrf.mxu0 }
 0x171   : > { %v651_v36 = vadd.f32 %v1457_v33, %v554_v32 }
 0x172   : > { %v641_v37 = vpop.f32.mrf.mxu0 }
 0x173   : > { %v2172_v38 = vadd.f32 %v1218_v34, %v651_v36  ;;  %v650_v39 = vadd.f32 %v641_v37, %v549_v35 }
 0x175   : > { %v662_v40 = vmax.f32 %v2172_v38, 0.0  ;;  %v659_v41 = vadd.f32 %v1218_v34, %v650_v39 }
 0x177   : > { %664 = vst [vmem:[#allocation3 + $0x10] sm:$0xff] %v662_v40  ;;  %v661_v42 = vmax.f32 %v659_v41, 0.0 }
 0x179   : > { %663 = vst [vmem:[#allocation3 + $0x8] sm:$0xff] %v661_v42 }
 0x17e   : > { %v1063_v43 = vld [vmem:[#allocation3 + $0x14] sm:$0xf] }
 0x180   : > { %v683_v44 = vld [vmem:[#allocation3 + $0x6] sm:$0xff]  ;;  %v684_v46 = vld [vmem:[#allocation3 + $0xe] sm:$0xff] }
 0x181   : > { %v665_v45 = vld [vmem:[#allocation3 + $0x4] sm:$0xff]  ;;  %1490 = vmatprep.mubr.f32.mxu1 %v683_v44  ;;  %v666_v47 = vld [vmem:[#allocation3 + $0xc] sm:$0xff] }
 0x182   : > { %1525 = vmatprep.mubr.f32.mxu0 %v665_v45  ;;  %1064 = vst [vmem:[#allocation3 + $0x4] sm:$0xf] %v1063_v43  ;;  %1491 = vmatmul.mubr.f32.vlgmr.msra.gmra.mxu1 %v684_v46 }
 0x183   : > { %1526 = vmatmul.mubr.f32.vlgmr.msra.gmra.mxu0 %v666_v47  ;;  %1529 = vmatpush3.msra.mxu1 %v868_v26 }
 0x184   : > { %1560 = vmatprep.mubr.f32.mxu1 %v661_v42  ;;  %1530 = vmatprep.subr.mxu1 %v867_v48 }
 0x185   : > { %1564 = vmatpush3.msra.mxu0 %v972_v27  ;;  %1531 = vmatpush3.msra.mxu1 %v867_v48 }
 0x186   : > { %1565 = vmatprep.subr.mxu0 %v971_v49  ;;  %1532 = vmatprep.subr.mxu1 %v866_v50 }
 0x187   : > { %1566 = vmatpush3.msra.mxu0 %v971_v49  ;;  %1533 = vmatpush3.msra.mxu1 %v866_v50 }
 0x188   : > { %1567 = vmatprep.subr.mxu0 %v970_v51  ;;  %1534 = vmatprep.subr.mxu1 %v865_v52 }
 0x189   : > { %1568 = vmatpush3.msra.mxu0 %v970_v51  ;;  %1535 = vmatpush3.msra.mxu1 %v865_v52 }
 0x18a   : > { %1569 = vmatprep.subr.mxu0 %v969_v53  ;;  %1536 = vmatprep.subr.mxu1 %v864_v54 }
 0x18b   : > { %1570 = vmatpush3.msra.mxu0 %v969_v53  ;;  %1537 = vmatpush3.msra.mxu1 %v864_v54 }
 0x18c   : > { %1571 = vmatprep.subr.mxu0 %v968_v55  ;;  %1538 = vmatprep.subr.mxu1 %v863_v56 }
 0x18d   : > { %1572 = vmatpush3.msra.mxu0 %v968_v55  ;;  %1539 = vmatpush3.msra.mxu1 %v863_v56 }
 0x18e   : > { %1573 = vmatprep.subr.mxu0 %v967_v57  ;;  %1540 = vmatprep.subr.mxu1 %v862_v58 }
 0x18f   : > { %1574 = vmatpush3.msra.mxu0 %v967_v57  ;;  %1541 = vmatpush3.msra.mxu1 %v862_v58 }
 0x190   : > { %1575 = vmatprep.subr.mxu0 %v966_v59  ;;  %1542 = vmatprep.subr.mxu1 %v861_v60 }
 0x191   : > { %1576 = vmatpush3.msra.mxu0 %v966_v59  ;;  %1543 = vmatpush3.msra.mxu1 %v861_v60 }
 0x192   : > { %1577 = vmatprep.subr.mxu0 %v965_v61  ;;  %1544 = vmatprep.subr.mxu1 %v860_v62 }
 0x193   : > { %1578 = vmatpush3.msra.mxu0 %v965_v61  ;;  %1545 = vmatpush3.msra.mxu1 %v860_v62 }
 0x194   : > { %1579 = vmatprep.subr.mxu0 %v964_v63  ;;  %1546 = vmatprep.subr.mxu1 %v859_v0 }
 0x195   : > { %1580 = vmatpush3.msra.mxu0 %v964_v63  ;;  %1547 = vmatpush3.msra.mxu1 %v859_v0 }
 0x196   : > { %1581 = vmatprep.subr.mxu0 %v963_v1  ;;  %1548 = vmatprep.subr.mxu1 %v858_v2 }
 0x197   : > { %1582 = vmatpush3.msra.mxu0 %v963_v1  ;;  %1549 = vmatpush3.msra.mxu1 %v858_v2 }
 0x198   : > { %1583 = vmatprep.subr.mxu0 %v962_v3  ;;  %1550 = vmatprep.subr.mxu1 %v857_v4 }
 0x199   : > { %1584 = vmatpush3.msra.mxu0 %v962_v3  ;;  %1551 = vmatpush3.msra.mxu1 %v857_v4 }
 0x19a   : > { %1585 = vmatprep.subr.mxu0 %v961_v5  ;;  %1552 = vmatprep.subr.mxu1 %v856_v6 }
 0x19b   : > { %1586 = vmatpush3.msra.mxu0 %v961_v5  ;;  %1553 = vmatpush3.msra.mxu1 %v856_v6 }
 0x19c   : > { %1587 = vmatprep.subr.mxu0 %v960_v7  ;;  %1554 = vmatprep.subr.mxu1 %v855_v8 }
 0x19d   : > { %1588 = vmatpush3.msra.mxu0 %v960_v7  ;;  %1555 = vmatpush3.msra.mxu1 %v855_v8 }
 0x19e   : > { %1589 = vmatprep.subr.mxu0 %v959_v9  ;;  %1556 = vmatprep.subr.mxu1 %v854_v10 }
 0x19f   : > { %1590 = vmatpush3.msra.mxu0 %v959_v9  ;;  %1557 = vmatpush3.msra.mxu1 %v854_v10 }
 0x1a0   : > { %1591 = vmatprep.subr.mxu0 %v958_v11  ;;  %1558 = vmatprep.subr.mxu1 %v853_v12 }
 0x1a1   : > { %1592 = vmatpush3.msra.mxu0 %v958_v11  ;;  %1559 = vmatpush3.msra.mxu1 %v853_v12 }
 0x1a2   : > { %1593 = vmatprep.subr.mxu0 %v957_v13  ;;  %1561 = vmatmul.mubr.f32.vlgmr.msra.gmra.mxu1 %v662_v40 }
 0x1a3   : > { %1594 = vmatpush3.msra.mxu0 %v957_v13  ;;  %1595 = vmatprep.mubr.f32.mxu0 %v2160_v15 }
 0x1a4   : > { %1596 = vmatmul.mubr.f32.vlgmr.msra.gmra.mxu0 %v2164_v16 }
 0x242   : > { %v1492_v14 = vpop.f32.mrf.mxu1 }
 0x243   : > { %v1527_v17 = vpop.f32.mrf.mxu0 }
 0x244   : > { %v767_v18 = vpop.f32.mrf.mxu1  ;;  %v848_v20 = vadd.f32 %v1527_v17, %v1492_v14 }
 0x245   : > { %v842_v19 = vpop.f32.mrf.mxu0 }
 0x246   : > { %v843_v24 = vadd.f32 %v842_v19, %v767_v18 }
 0x262   : > { %v1562_v21 = vpop.f32.mrf.mxu1 }
 0x263   : > { %v945_v25 = vadd.f32 %v1562_v21, %v848_v20 }
 0x264   : > { %v935_v15 = vpop.f32.mrf.mxu1  ;;  %v1597_v16 = vpop.f32.mrf.mxu0 }
 0x265   : > { %v954_v26 = vadd.f32 %v1219_v22, %v945_v25  ;;  %v944_v27 = vadd.f32 %v935_v15, %v843_v24  ;;  %v1052_v28 = vadd.f32 %v1597_v16, %v1220_v23 }
 0x266   : > { %v1046_v29 = vpop.f32.mrf.mxu0 }
 0x267   : > { %v956_v30 = vmax.f32 %v954_v26, 0.0  ;;  %v953_v31 = vadd.f32 %v1219_v22, %v944_v27  ;;  %v1047_v34 = vadd.f32 %v1220_v23, %v1046_v29 }
 0x269   : > { %v955_v32 = vmax.f32 %v953_v31, 0.0  ;;  %v1056_v33 = vadd.f32 %v1052_v28, %v956_v30 }
 0x26b   : > { %v1058_v35 = vmax.f32 %v1056_v33, 0.0  ;;  %v1055_v36 = vadd.f32 %v1047_v34, %v955_v32 }
 0x26d   : > { %1060 = vst [vmem:[%s2156_s3 + $0x8] sm:$0xff] %v1058_v35  ;;  %v1057_v37 = vmax.f32 %v1055_v36, 0.0 }
 0x26f   : > { %1059 = vst [vmem:[%s2156_s3] sm:$0xff] %v1057_v37 }
 0x270   : > { %1831 = shalt.err (!%p1828_p6)
}
 0x271   : > { %s1832_s3 = scalar_lea.hbm %s2193_s24, 256  ;;  %s1836_s12 = scalar_lea.hbm %s2292_s22, 2048 }
 0x272   : > { %p1833_p11 = scmp.ne.s32.totalorder %s2193_s24, %s1832_s3  ;;  %p1837_p10 = scmp.lt.s32.totalorder %s2193_s24, %s2292_s22 }
 0x273   : > { %p1838_p0 = scmp.lt.s32.totalorder %s1836_s12, %s1832_s3 }
 0x274   : > { %p1834_p9 = pnand %p1833_p11, %p2098_p13 }
 0x275   : > { %p1839_p8 = por %p1838_p0, %p1837_p10 }
 0x276   : > { %p1835_p12 = pneg %p1834_p9 }
 0x278   : > { %p1840_p1 = pnand %p1839_p8, %p1835_p12 }
 0x27a   : > { %1843 = shalt.err (!%p1840_p1)
}
 0x27b   : > { %s1932_s1 = smov 128   ;;  %s1933_s18 = smov 8  }
 0x27c   : > { %1612 = dma.vmem_to_hbm [thread:$0]  (%p2098_p13), %s2195_s19, 256, %s2193_s24, %s1066_s17, %s1932_s1, %s1932_s1, %s1933_s18  }
 0x27d PF: > { %s2293_s27 = sld [smem:[#allocation17_spill]]  ;;  %p1639_p4 = scmp.ge.s32.totalorder %s1922_s8, 2 }
 0x27e   : > { %s2294_s28 = sld [smem:[#allocation19_spill]] }
 0x283   : > { %s1096_s29 = sand.u32 1, %s2293_s27  }
 0x284   : > { %p2295_p3 = scmp.ne.s32.totalorder %s2294_s28, 0  ;;  %s1097_s14 = scalar_lea.sflag [#allocation6], %s1096_s29 }
 0x286   : > { %p1629_p2 = pnand %p1639_p4, %p2295_p3 }
 0x288   : > { %p1630_p5 = pneg %p1629_p2 }
 0x28a   : > { %1889 = dma.done.wait (%p1630_p5), %s1097_s14, 256  }
 0x28b   : > { %1891 = vsyncadd (%p1630_p5), %s1097_s14, 4294967040  ;;  %s25_s8 = sadd.s32 1, %s1922_s8   ;;  %s2296_s27 = sld [smem:[#allocation18_spill]] }
 0x28c   : > { %p22_p7 = scmp.ge.s32.totalorder %s25_s8, 10   ;;  %s2297_s29 = sld [smem:[#allocation20_spill]] }
 0x28d   : > { %s2298_s24 = smov %s1898_s25  ;;  %s2299_s25 = smov %s1902_s26 }
 0x28e   : > { %s2300_s26 = smov %s2115_s5  ;;  %s2301_s28 = smov %s1918_s30 }
 0x28f   : > { %s2302_s30 = smov %s2308_s20  ;;  %24 = sbr.rel (!%p22_p7) target bundleno = 14 (0xe), region = 109 }
 0x294   :  { %1102 = vsyncpa [#allocation5], 1 }
 0x295   :  { %1104 = vsyncpa [#allocation5 + $0x1], 1 }
 0x296   :  { %1105 = vsyncpa [#allocation8], 1 }
 0x297   :  { %1106 = vsyncpa [#allocation11], 1 }
 0x298   :  { %1107 = vsyncpa [#allocation6], 1 }
 0x299   :  { %1109 = vsyncpa [#allocation6 + $0x1], 1 }

</bundles_post_ra>
